<compile_context>
chip_gen: v6e
topology: v6e:2x2x1
jax: 0.10.0
libtpu: 0.0.40
codegen_flags: <defaults>
</compile_context>

<pallas_src>
import functools

import jax
import jax.numpy as jnp
from jax.experimental import pallas as pl
from jax.experimental.pallas import tpu as pltpu

LANE = 128        # lane width: every feature dim is padded to a multiple of this
BIAS_ROWS = 16    # sublane-aligned bias segment (works for f32 and bf16 packing)


def _round_up(n, m):
    return ((n + m - 1) // m) * m


def mlp_kernel(x_ref, p_ref, o_ref, *, P, compute_dtype):
    """x_ref: (TB, P) f32 tile.  p_ref: packed weight slab (3P + 3*BIAS_ROWS, P).
    o_ref: (TB, P) lane-dense output tile."""
    x = x_ref[...]

    # Static slices into the single resident parameter slab.
    o = 0
    w1 = p_ref[o:o + P, :]; o += P
    b1 = p_ref[o:o + 1, :].astype(jnp.float32); o += BIAS_ROWS
    w2 = p_ref[o:o + P, :]; o += P
    b2 = p_ref[o:o + 1, :].astype(jnp.float32); o += BIAS_ROWS
    w3 = p_ref[o:o + P, :]; o += P
    b3 = p_ref[o:o + 1, :].astype(jnp.float32)

    # linear1 + relu (MXU dot, f32 accumulation; epilogue in f32)
    h1 = jnp.dot(x.astype(compute_dtype), w1, preferred_element_type=jnp.float32)
    h1 = jnp.maximum(h1 + b1, 0.0)
    # linear2 + relu
    h2 = jnp.dot(h1.astype(compute_dtype), w2, preferred_element_type=jnp.float32)
    h2 = jnp.maximum(h2 + b2, 0.0)
    # linear3 (no activation)
    out = jnp.dot(h2.astype(compute_dtype), w3, preferred_element_type=jnp.float32) + b3
    o_ref[...] = out.astype(o_ref.dtype)


def _pack_params(params, P, param_dtype):
    """Pack (w1,b1,w2,b2,w3,b3) into one zero-padded (3P + 3*BIAS_ROWS, P) slab.
    Weights are (in, out); biases are (1, out).  Padding is zero, so padded
    columns/rows contribute nothing and padded hidden lanes stay exactly 0."""
    w1, b1, w2, b2, w3, b3 = params
    rows = 3 * P + 3 * BIAS_ROWS
    slab = jnp.zeros((rows, P), jnp.float32)
    o = 0
    for w, b in ((w1, b1), (w2, b2), (w3, b3)):
        slab = slab.at[o:o + w.shape[0], :w.shape[1]].set(w.astype(jnp.float32))
        o += P
        slab = slab.at[o:o + 1, :b.shape[1]].set(b.reshape(1, -1).astype(jnp.float32))
        o += BIAS_ROWS
    return slab.astype(param_dtype)


def linear_qnet_forward(x, params, *, param_dtype=jnp.float32, block_batch=None):
    """params = (w1, b1, w2, b2, w3, b3) with w_i shaped (in, out), b_i (1, out)."""
    w1, _, w2, _, w3, _ = params
    input_size, hidden1 = w1.shape
    hidden2, out_size = w2.shape[1], w3.shape[1]
    B = x.shape[0]

    # One common padded feature width for x / hidden / out (>= 128, lane-aligned).
    P = _round_up(max(input_size, hidden1, hidden2, out_size), LANE)
    slab = _pack_params(params, P, param_dtype)

    # Batch tile: big enough to amortize per-step overhead, sublane-aligned (x8).
    if block_batch is None:
        TB = min(512, _round_up(B, 8))
    else:
        TB = _round_up(block_batch, 8)
    Bp = _round_up(B, TB)

    # Zero-pad activations to (Bp, P): lane-dense input loads and output stores.
    x_p = jnp.zeros((Bp, P), x.dtype).at[:B, :input_size].set(x)

    grid = (pl.cdiv(Bp, TB),)
    out_p = pl.pallas_call(
        functools.partial(mlp_kernel, P=P, compute_dtype=param_dtype),
        out_shape=jax.ShapeDtypeStruct((Bp, P), x.dtype),
        grid=grid,
        in_specs=[
            # streamed activation tile
            pl.BlockSpec((TB, P), lambda i: (i, 0)),
            # packed weights: constant block index -> fetched once, VMEM-resident
            pl.BlockSpec(slab.shape, lambda i: (0, 0)),
        ],
        out_specs=pl.BlockSpec((TB, P), lambda i: (i, 0)),
        compiler_params=pltpu.CompilerParams(dimension_semantics=("parallel",)),
    )(x_p, slab)
    return out_p[:B, :out_size]


def init_params(key, input_size, hidden1, hidden2, output_size, dtype=jnp.float32):
    """Deterministic init mimicking nn.Linear's U(-1/sqrt(fan_in), 1/sqrt(fan_in))."""
    ks = jax.random.split(key, 6)

    def lin(kw, kb, fan_in, fan_out):
        bound = 1.0 / jnp.sqrt(fan_in)
        w = jax.random.uniform(kw, (fan_in, fan_out), dtype, -bound, bound)
        b = jax.random.uniform(kb, (1, fan_out), dtype, -bound, bound)
        return w, b

    w1, b1 = lin(ks[0], ks[1], input_size, hidden1)
    w2, b2 = lin(ks[2], ks[3], hidden1, hidden2)
    w3, b3 = lin(ks[4], ks[5], hidden2, output_size)
    return (w1, b1, w2, b2, w3, b3)


def reference_forward(x, params):
    w1, b1, w2, b2, w3, b3 = params
    h1 = jnp.maximum(x @ w1 + b1, 0.0)
    h2 = jnp.maximum(h1 @ w2 + b2, 0.0)
    return h2 @ w3 + b3


# TODO(synk): LinearQNet.save() is torch file I/O, not a forward-pass op — not translated.

if __name__ == "__main__":
    # LinearQNet(inputSize=16, hiddenSize1=32, hiddenSize2=32, outputSize=4)
    input_size, hidden1, hidden2, output_size = 16, 32, 32, 4

    key = jax.random.PRNGKey(0)
    k_x, k_p, k_x2 = jax.random.split(key, 3)
    params = init_params(k_p, input_size, hidden1, hidden2, output_size)

    # Small batch (matches the module's tiny inference case).
    x_small = jax.random.normal(k_x, (8, input_size), jnp.float32)
    out_small = jax.block_until_ready(linear_qnet_forward(x_small, params))
    ref_small = reference_forward(x_small, params)
    assert out_small.shape == (8, output_size)
    assert jnp.allclose(out_small, ref_small, atol=1e-5, rtol=1e-5)

    # Larger batch: amortizes dispatch/DMA overhead; weights stay VMEM-resident
    # while activation tiles stream over the batch grid.
    x_big = jax.random.normal(k_x2, (256, input_size), jnp.float32)
    out_big = jax.block_until_ready(linear_qnet_forward(x_big, params))
    ref_big = reference_forward(x_big, params)
    assert out_big.shape == (256, output_size)
    assert jnp.allclose(out_big, ref_big, atol=1e-5, rtol=1e-5)

    # bf16 parameter/compute path (half the param DMA bytes, f32 accumulation).
    out_bf16 = jax.block_until_ready(
        linear_qnet_forward(x_big, params, param_dtype=jnp.bfloat16))
    assert jnp.allclose(out_bf16, ref_big, atol=5e-2, rtol=5e-2)

    print("KERNEL_OK")
</pallas_src>

<mosaic_0001>
module attributes {stable_mosaic.version = 11 : i64} {
  func.func @mlp_kernel(%arg0: i32, %arg1: memref<8x128xf32, #tpu.memory_space<vmem>>, %arg2: memref<432x128xf32, #tpu.memory_space<vmem>>, %arg3: memref<8x128xf32, #tpu.memory_space<vmem>>) attributes {dimension_semantics = [#tpu.dimension_semantics<parallel>], iteration_bounds = array<i64: 1>, scalar_prefetch = 0 : i64, scratch_operands = 0 : i64, tpu.core_type = #tpu.core_type<tc>, window_params = [{transform_indices = @transform_0, window_bounds = array<i64: 8, 128>}, {pipeline_mode = #tpu.pipeline_mode<synchronous>, transform_indices = @transform_1, window_bounds = array<i64: 432, 128>}, {transform_indices = @transform_2, window_bounds = array<i64: 8, 128>}]} {
    %c0 = arith.constant 0 : index
    %c0_0 = arith.constant 0 : index
    %0 = vector.load %arg1[%c0, %c0_0] : memref<8x128xf32, #tpu.memory_space<vmem>>, vector<8x128xf32>
    %c0_1 = arith.constant 0 : index
    %c0_2 = arith.constant 0 : index
    %1 = vector.load %arg2[%c0_1, %c0_2] : memref<432x128xf32, #tpu.memory_space<vmem>>, vector<128x128xf32>
    %c128 = arith.constant 128 : index
    %c0_3 = arith.constant 0 : index
    %2 = vector.load %arg2[%c128, %c0_3] : memref<432x128xf32, #tpu.memory_space<vmem>>, vector<1x128xf32>
    %c144 = arith.constant 144 : index
    %c0_4 = arith.constant 0 : index
    %3 = vector.load %arg2[%c144, %c0_4] : memref<432x128xf32, #tpu.memory_space<vmem>>, vector<128x128xf32>
    %c272 = arith.constant 272 : index
    %c0_5 = arith.constant 0 : index
    %4 = vector.load %arg2[%c272, %c0_5] : memref<432x128xf32, #tpu.memory_space<vmem>>, vector<1x128xf32>
    %c288 = arith.constant 288 : index
    %c0_6 = arith.constant 0 : index
    %5 = vector.load %arg2[%c288, %c0_6] : memref<432x128xf32, #tpu.memory_space<vmem>>, vector<128x128xf32>
    %c416 = arith.constant 416 : index
    %c0_7 = arith.constant 0 : index
    %6 = vector.load %arg2[%c416, %c0_7] : memref<432x128xf32, #tpu.memory_space<vmem>>, vector<1x128xf32>
    %cst = arith.constant dense<0.000000e+00> : vector<8x128xf32>
    %7 = tpu.matmul %0, %1, %cst {dimension_numbers = #tpu.dot_dimension_numbers<[1], [0], [0], [1], [0, 0, 1, 1], [], []>} : vector<8x128xf32>, vector<128x128xf32>, vector<8x128xf32> -> vector<8x128xf32>
    %8 = vector.broadcast %2 : vector<1x128xf32> to vector<8x128xf32>
    %9 = arith.addf %7, %8 : vector<8x128xf32>
    %cst_8 = arith.constant 0.000000e+00 : f32
    %10 = vector.broadcast %cst_8 : f32 to vector<8x128xf32>
    %11 = arith.maximumf %9, %10 : vector<8x128xf32>
    %cst_9 = arith.constant dense<0.000000e+00> : vector<8x128xf32>
    %12 = tpu.matmul %11, %3, %cst_9 {dimension_numbers = #tpu.dot_dimension_numbers<[1], [0], [0], [1], [0, 0, 1, 1], [], []>} : vector<8x128xf32>, vector<128x128xf32>, vector<8x128xf32> -> vector<8x128xf32>
    %13 = vector.broadcast %4 : vector<1x128xf32> to vector<8x128xf32>
    %14 = arith.addf %12, %13 : vector<8x128xf32>
    %cst_10 = arith.constant 0.000000e+00 : f32
    %15 = vector.broadcast %cst_10 : f32 to vector<8x128xf32>
    %16 = arith.maximumf %14, %15 : vector<8x128xf32>
    %cst_11 = arith.constant dense<0.000000e+00> : vector<8x128xf32>
    %17 = tpu.matmul %16, %5, %cst_11 {dimension_numbers = #tpu.dot_dimension_numbers<[1], [0], [0], [1], [0, 0, 1, 1], [], []>} : vector<8x128xf32>, vector<128x128xf32>, vector<8x128xf32> -> vector<8x128xf32>
    %18 = vector.broadcast %6 : vector<1x128xf32> to vector<8x128xf32>
    %19 = arith.addf %17, %18 : vector<8x128xf32>
    %c0_12 = arith.constant 0 : index
    %c0_13 = arith.constant 0 : index
    %20 = vector.load %arg3[%c0_12, %c0_13] : memref<8x128xf32, #tpu.memory_space<vmem>>, vector<8x128xf32>
    tpu.vector_store %arg3[%c0_12, %c0_13], %19 {strides = array<i32>} : memref<8x128xf32, #tpu.memory_space<vmem>>, vector<8x128xf32>,
    return
  }
  func.func @transform_0(%arg0: i32) -> (i32, i32) {
    %c0_i32 = arith.constant 0 : i32
    %c0_i32_0 = arith.constant 0 : i32
    return %arg0, %c0_i32 : i32, i32
  }
  func.func @transform_1(%arg0: i32) -> (i32, i32) {
    %c0_i32 = arith.constant 0 : i32
    %c0_i32_0 = arith.constant 0 : i32
    %c0_i32_1 = arith.constant 0 : i32
    return %c0_i32, %c0_i32_0 : i32, i32
  }
  func.func @transform_2(%arg0: i32) -> (i32, i32) {
    %c0_i32 = arith.constant 0 : i32
    %c0_i32_0 = arith.constant 0 : i32
    return %arg0, %c0_i32 : i32, i32
  }
}

</mosaic_0001>

<bundles_post_ra>
// kernel: tpu_custom_call.1
= control target key start
LH: loop header
LB: loop body
LE: loop exit
PB: predicated region body
PF: predicated region fallthrough
CT: control target
= control target key end

     0   :  { %7 = vsyncpa [#allocation3], 0  ;;  %s648_s0 = inlined_call_operand.hbm [shape: f32[8,128], index: 0, kind: input, shape index: {}]   ;;  %s649_s1 = inlined_call_operand.hbm [shape: f32[432,128], index: 1, kind: input, shape index: {}]   ;;  %s650_s2 = inlined_call_operand.hbm [shape: f32[8,128], index: 2, kind: output, shape index: {}]  }
   0x1   :  { %8 = vsyncpa [#allocation6], 0 }
   0x2   :  { %9 = vsyncpa [#allocation4], 0  ;;  %s563_s9 = smov [#allocation2]   ;;  %s564_s11 = smov [#allocation5]  }
   0x3   :  { %s16_s10 = sshll.u32 %s563_s9, 4  ;;  %s25_s12 = sshll.u32 %s564_s11, 4  ;;  %s17_s10 = int_to_ptr.vmem [resolvable:$true] %s16_s10  ;;  %s26_s12 = int_to_ptr.vmem [resolvable:$true] %s25_s12 }
   0x4   :  { %s505_s13 = scalar_lea.vmem %s17_s10, 128  ;;  %p510_p1 = scmp.lt.s32.totalorder %s17_s10, %s17_s10 }
   0x5   :  { %p506_p0 = scmp.ne.s32.totalorder %s17_s10, %s505_s13  ;;  %p511_p2 = scmp.lt.s32.totalorder %s505_s13, %s505_s13 }
   0x7   :  { %p512_p3 = por %p511_p2, %p510_p1 }
   0x9   :  { %p513_p4 = pnand %p512_p3, %p506_p0 }
   0xb   :  { %516 = shalt.err (!%p513_p4)
}
   0xc   :  { %19 = dma.hbm_to_vmem [thread:$0]  %s648_s0, 128, %s17_s10, [#allocation3]  }
   0xd   :  { %s525_s16 = scalar_lea.vmem %s26_s12, 6912  ;;  %p530_p6 = scmp.lt.s32.totalorder %s26_s12, %s26_s12 }
   0xe   :  { %p526_p5 = scmp.ne.s32.totalorder %s26_s12, %s525_s16  ;;  %p531_p7 = scmp.lt.s32.totalorder %s525_s16, %s525_s16 }
  0x10   :  { %p532_p8 = por %p531_p7, %p530_p6 }
  0x12   :  { %p533_p9 = pnand %p532_p8, %p526_p5 }
  0x14   :  { %536 = shalt.err (!%p533_p9)
}
  0x15   :  { %s565_s17 = smov 128   ;;  %s566_s18 = smov 8  }
  0x16   :  { %31 = dma.hbm_to_vmem [thread:$0]  %s649_s1, 6912, %s26_s12, [#allocation6], %s565_s17, %s565_s17, %s566_s18  }
  0x17   :  { %557 = dma.done.wait [#allocation3], 128  }
  0x18   :  { %558 = vsyncadd [#allocation3], 4294967168 }
  0x19   :  { %559 = dma.done.wait [#allocation6], 6912  }
  0x1a   :  { %560 = vsyncadd [#allocation6], 4294960384  ;;  %v567_v0 = vmov 0.0   ;;  %vm568_vm0 = vmmov 0   ;;  %v54_v1 = vld [vmem:[#allocation5 + $0x78] sm:$0xff]  ;;  %v53_v2 = vld [vmem:[#allocation5 + $0x70] sm:$0xff] }
  0x1b   :  { %385 = vmatprep.subr.mxu0 %v567_v0  ;;  %417 = vmatprep.mubr.msk.f32.mxu0 %vm568_vm0, %v567_v0  ;;  %v52_v3 = vld [vmem:[#allocation5 + $0x68] sm:$0xff]  ;;  %v51_v4 = vld [vmem:[#allocation5 + $0x60] sm:$0xff]  ;;  %v50_v6 = vld [vmem:[#allocation5 + $0x58] sm:$0xff]  ;;  %s569_s0 = smov [#allocation7]  }
  0x1c   :  { %420 = vmatprep.subr.mxu1 %v567_v0  ;;  %452 = vmatprep.mubr.msk.f32.mxu1 %vm568_vm0, %v567_v0  ;;  %v71_v5 = vld [vmem:[#allocation5 + $0x108] sm:$0xff]  ;;  %v70_v7 = vld [vmem:[#allocation5 + $0x100] sm:$0xff]  ;;  %v69_v8 = vld [vmem:[#allocation5 + $0xf8] sm:$0xff]  ;;  %s321_s1 = sshll.u32 %s569_s0, 4  ;;  %s322_s1 = int_to_ptr.vmem [resolvable:$true] %s321_s1 }
  0x1d   :  { %386 = vmatpush3.msra.mxu0 %v54_v1  ;;  %421 = vmatpush3.msra.mxu1 %v71_v5  ;;  %v49_v9 = vld [vmem:[#allocation5 + $0x50] sm:$0xff]  ;;  %v48_v11 = vld [vmem:[#allocation5 + $0x48] sm:$0xff]  ;;  %v47_v13 = vld [vmem:[#allocation5 + $0x40] sm:$0xff]  ;;  %s537_s21 = scalar_lea.vmem %s322_s1, 128  ;;  %p542_p11 = scmp.lt.s32.totalorder %s322_s1, %s322_s1 }
  0x1e   :  { %387 = vmatprep.subr.mxu0 %v567_v0  ;;  %422 = vmatprep.subr.mxu1 %v567_v0  ;;  %v68_v10 = vld [vmem:[#allocation5 + $0xf0] sm:$0xff]  ;;  %v67_v12 = vld [vmem:[#allocation5 + $0xe8] sm:$0xff]  ;;  %v66_v14 = vld [vmem:[#allocation5 + $0xe0] sm:$0xff]  ;;  %p538_p10 = scmp.ne.s32.totalorder %s322_s1, %s537_s21  ;;  %p543_p12 = scmp.lt.s32.totalorder %s537_s21, %s537_s21 }
  0x1f   :  { %388 = vmatpush3.msra.mxu0 %v53_v2  ;;  %423 = vmatpush3.msra.mxu1 %v70_v7  ;;  %v46_v15 = vld [vmem:[#allocation5 + $0x38] sm:$0xff]  ;;  %v45_v17 = vld [vmem:[#allocation5 + $0x30] sm:$0xff]  ;;  %v44_v19 = vld [vmem:[#allocation5 + $0x28] sm:$0xff] }
  0x20   :  { %389 = vmatprep.subr.mxu0 %v567_v0  ;;  %424 = vmatprep.subr.mxu1 %v567_v0  ;;  %v65_v16 = vld [vmem:[#allocation5 + $0xd8] sm:$0xff]  ;;  %v64_v18 = vld [vmem:[#allocation5 + $0xd0] sm:$0xff]  ;;  %v63_v20 = vld [vmem:[#allocation5 + $0xc8] sm:$0xff]  ;;  %p544_p13 = por %p543_p12, %p542_p11 }
  0x21   :  { %390 = vmatpush3.msra.mxu0 %v52_v3  ;;  %425 = vmatpush3.msra.mxu1 %v69_v8  ;;  %v43_v21 = vld [vmem:[#allocation5 + $0x20] sm:$0xff]  ;;  %v42_v23 = vld [vmem:[#allocation5 + $0x18] sm:$0xff]  ;;  %v41_v25 = vld [vmem:[#allocation5 + $0x10] sm:$0xff] }
  0x22   :  { %391 = vmatprep.subr.mxu0 %v567_v0  ;;  %426 = vmatprep.subr.mxu1 %v567_v0  ;;  %v62_v22 = vld [vmem:[#allocation5 + $0xc0] sm:$0xff]  ;;  %v61_v24 = vld [vmem:[#allocation5 + $0xb8] sm:$0xff]  ;;  %v60_v26 = vld [vmem:[#allocation5 + $0xb0] sm:$0xff]  ;;  %p545_p0 = pnand %p544_p13, %p538_p10 }
  0x23   :  { %392 = vmatpush3.msra.mxu0 %v51_v4  ;;  %427 = vmatpush3.msra.mxu1 %v68_v10  ;;  %v40_v27 = vld [vmem:[#allocation5 + $0x8] sm:$0xff]  ;;  %v39_v29 = vld [vmem:[#allocation5] sm:$0xff]  ;;  %v38_v30 = vld [vmem:[#allocation2] sm:$0xff] }
  0x24   :  { %393 = vmatprep.subr.mxu0 %v567_v0  ;;  %428 = vmatprep.subr.mxu1 %v567_v0  ;;  %v59_v28 = vld [vmem:[#allocation5 + $0xa8] sm:$0xff]  ;;  %v58_v31 = vld [vmem:[#allocation5 + $0xa0] sm:$0xff]  ;;  %v57_v32 = vld [vmem:[#allocation5 + $0x98] sm:$0xff] }
  0x25   :  { %394 = vmatpush3.msra.mxu0 %v50_v6  ;;  %429 = vmatpush3.msra.mxu1 %v67_v12  ;;  %v56_v33 = vld [vmem:[#allocation5 + $0x90] sm:$0xff]  ;;  %v88_v34 = vld [vmem:[#allocation5 + $0x198] sm:$0xff]  ;;  %v86_v36 = vld [vmem:[#allocation5 + $0x188] sm:$0xff] }
  0x26   :  { %395 = vmatprep.subr.mxu0 %v567_v0  ;;  %430 = vmatprep.subr.mxu1 %v567_v0  ;;  %v87_v35 = vld [vmem:[#allocation5 + $0x190] sm:$0xff]  ;;  %v85_v37 = vld [vmem:[#allocation5 + $0x180] sm:$0xff]  ;;  %v84_v38 = vld [vmem:[#allocation5 + $0x178] sm:$0xff] }
  0x27   :  { %396 = vmatpush3.msra.mxu0 %v49_v9  ;;  %431 = vmatpush3.msra.mxu1 %v66_v14  ;;  %v83_v39 = vld [vmem:[#allocation5 + $0x170] sm:$0xff]  ;;  %v82_v40 = vld [vmem:[#allocation5 + $0x168] sm:$0xff]  ;;  %v81_v41 = vld [vmem:[#allocation5 + $0x160] sm:$0xff] }
  0x28   :  { %397 = vmatprep.subr.mxu0 %v567_v0  ;;  %432 = vmatprep.subr.mxu1 %v567_v0  ;;  %v80_v42 = vld [vmem:[#allocation5 + $0x158] sm:$0xff]  ;;  %v79_v43 = vld [vmem:[#allocation5 + $0x150] sm:$0xff]  ;;  %v78_v44 = vld [vmem:[#allocation5 + $0x148] sm:$0xff] }
  0x29   :  { %398 = vmatpush3.msra.mxu0 %v48_v11  ;;  %433 = vmatpush3.msra.mxu1 %v65_v16  ;;  %v77_v45 = vld [vmem:[#allocation5 + $0x140] sm:$0xff]  ;;  %v76_v46 = vld [vmem:[#allocation5 + $0x138] sm:$0xff]  ;;  %v75_v52 = vld [vmem:[#allocation5 + $0x130] sm:$0xff] }
  0x2a   :  { %399 = vmatprep.subr.mxu0 %v567_v0  ;;  %434 = vmatprep.subr.mxu1 %v567_v0  ;;  %v331_v47 = vld [vmem:[#allocation5 + $0x80] ss:$0 sm:$0xff]  ;;  %v74_v53 = vld [vmem:[#allocation5 + $0x128] sm:$0xff]  ;;  %v332_v55 = vld [vmem:[#allocation5 + $0x110] ss:$0 sm:$0xff] }
  0x2b   :  { %400 = vmatpush3.msra.mxu0 %v47_v13  ;;  %435 = vmatpush3.msra.mxu1 %v64_v18  ;;  %v73_v54 = vld [vmem:[#allocation5 + $0x120] sm:$0xff] }
  0x2c   :  { %401 = vmatprep.subr.mxu0 %v567_v0  ;;  %436 = vmatprep.subr.mxu1 %v567_v0  ;;  %v333_v60 = vld [vmem:[#allocation5 + $0x1a0] ss:$0 sm:$0xff] }
  0x2d   :  { %402 = vmatpush3.msra.mxu0 %v46_v15  ;;  %437 = vmatpush3.msra.mxu1 %v63_v20 }
  0x2e   :  { %403 = vmatprep.subr.mxu0 %v567_v0  ;;  %438 = vmatprep.subr.mxu1 %v567_v0 }
  0x2f   :  { %404 = vmatpush3.msra.mxu0 %v45_v17  ;;  %439 = vmatpush3.msra.mxu1 %v62_v22 }
  0x30   :  { %405 = vmatprep.subr.mxu0 %v567_v0  ;;  %440 = vmatprep.subr.mxu1 %v567_v0 }
  0x31   :  { %406 = vmatpush3.msra.mxu0 %v44_v19  ;;  %441 = vmatpush3.msra.mxu1 %v61_v24 }
  0x32   :  { %407 = vmatprep.subr.mxu0 %v567_v0  ;;  %442 = vmatprep.subr.mxu1 %v567_v0 }
  0x33   :  { %408 = vmatpush3.msra.mxu0 %v43_v21  ;;  %443 = vmatpush3.msra.mxu1 %v60_v26 }
  0x34   :  { %409 = vmatprep.subr.mxu0 %v567_v0  ;;  %444 = vmatprep.subr.mxu1 %v567_v0 }
  0x35   :  { %410 = vmatpush3.msra.mxu0 %v42_v23  ;;  %445 = vmatpush3.msra.mxu1 %v59_v28 }
  0x36   :  { %411 = vmatprep.subr.mxu0 %v567_v0  ;;  %446 = vmatprep.subr.mxu1 %v567_v0 }
  0x37   :  { %412 = vmatpush3.msra.mxu0 %v41_v25  ;;  %447 = vmatpush3.msra.mxu1 %v58_v31 }
  0x38   :  { %413 = vmatprep.subr.mxu0 %v567_v0  ;;  %448 = vmatprep.subr.mxu1 %v567_v0 }
  0x39   :  { %414 = vmatpush3.msra.mxu0 %v40_v27  ;;  %449 = vmatpush3.msra.mxu1 %v57_v32 }
  0x3a   :  { %415 = vmatprep.subr.mxu0 %v567_v0  ;;  %450 = vmatprep.subr.mxu1 %v567_v0 }
  0x3b   :  { %416 = vmatpush3.msra.mxu0 %v39_v29  ;;  %451 = vmatpush3.msra.mxu1 %v56_v33 }
  0x3c   :  { %418 = vmatmul.mubr.f32.vlgmr.msra.gmra.mxu0 %v38_v30  ;;  %455 = vmatprep.subr.mxu0 %v567_v0 }
  0x3d   :  { %487 = vmatprep.mubr.msk.f32.mxu0 %vm568_vm0, %v567_v0  ;;  %456 = vmatpush3.msra.mxu0 %v88_v34 }
  0x3e   :  { %457 = vmatprep.subr.mxu0 %v567_v0 }
  0x3f   :  { %458 = vmatpush3.msra.mxu0 %v87_v35 }
  0x40   :  { %459 = vmatprep.subr.mxu0 %v567_v0 }
  0x41   :  { %460 = vmatpush3.msra.mxu0 %v86_v36 }
  0x42   :  { %461 = vmatprep.subr.mxu0 %v567_v0 }
  0x43   :  { %462 = vmatpush3.msra.mxu0 %v85_v37 }
  0x44   :  { %463 = vmatprep.subr.mxu0 %v567_v0 }
  0x45   :  { %464 = vmatpush3.msra.mxu0 %v84_v38 }
  0x46   :  { %465 = vmatprep.subr.mxu0 %v567_v0 }
  0x47   :  { %466 = vmatpush3.msra.mxu0 %v83_v39 }
  0x48   :  { %467 = vmatprep.subr.mxu0 %v567_v0 }
  0x49   :  { %468 = vmatpush3.msra.mxu0 %v82_v40 }
  0x4a   :  { %469 = vmatprep.subr.mxu0 %v567_v0 }
  0x4b   :  { %470 = vmatpush3.msra.mxu0 %v81_v41 }
  0x4c   :  { %471 = vmatprep.subr.mxu0 %v567_v0 }
  0x4d   :  { %472 = vmatpush3.msra.mxu0 %v80_v42 }
  0x4e   :  { %473 = vmatprep.subr.mxu0 %v567_v0 }
  0x4f   :  { %474 = vmatpush3.msra.mxu0 %v79_v43 }
  0x50   :  { %475 = vmatprep.subr.mxu0 %v567_v0 }
  0x51   :  { %476 = vmatpush3.msra.mxu0 %v78_v44 }
  0x52   :  { %477 = vmatprep.subr.mxu0 %v567_v0 }
  0x53   :  { %478 = vmatpush3.msra.mxu0 %v77_v45 }
  0x54   :  { %479 = vmatprep.subr.mxu0 %v567_v0 }
  0x55   :  { %480 = vmatpush3.msra.mxu0 %v76_v46 }
  0x56   :  { %481 = vmatprep.subr.mxu0 %v567_v0 }
  0x57   :  { %482 = vmatpush3.msra.mxu0 %v75_v52 }
  0x58   :  { %483 = vmatprep.subr.mxu0 %v567_v0 }
  0x59   :  { %484 = vmatpush3.msra.mxu0 %v74_v53 }
  0x5a   :  { %485 = vmatprep.subr.mxu0 %v567_v0 }
  0x5b   :  { %486 = vmatpush3.msra.mxu0 %v73_v54 }
  0xfc   :  { %v160_v48 = vpop.f32.mrf.mxu0 }
  0xfd   :  { %v161_v49 = vadd.f32 %v331_v47, %v160_v48 }
  0xfe   :  { %v419_v50 = vpop.f32.mrf.mxu0 }
  0xff   :  { %v164_v51 = vmax.f32 %v161_v49, 0.0 }
 0x101   :  { %453 = vmatmul.mubr.f32.vlgmr.msra.gmra.mxu1 %v164_v51 }
 0x1c1   :  { %v235_v56 = vpop.f32.mrf.mxu1 }
 0x1c2   :  { %v236_v57 = vadd.f32 %v332_v55, %v235_v56 }
 0x1c3   :  { %v454_v58 = vpop.f32.mrf.mxu1 }
 0x1c4   :  { %v239_v59 = vmax.f32 %v236_v57, 0.0 }
 0x1c6   :  { %488 = vmatmul.mubr.f32.vlgmr.msra.gmra.mxu0 %v239_v59 }
 0x286   :  { %v310_v61 = vpop.f32.mrf.mxu0 }
 0x287   :  { %v311_v62 = vadd.f32 %v333_v60, %v310_v61 }
 0x288   :  { %v489_v63 = vpop.f32.mrf.mxu0 }
 0x289   :  { %314 = vst [vmem:[#allocation7] sm:$0xff] %v311_v62 }
 0x28a   :  { %548 = shalt.err (!%p545_p0)
}
 0x28b   :  { %324 = dma.vmem_to_hbm [thread:$0]  %s322_s1, 128, %s650_s2, [#allocation4]  }
 0x28c   :  { %561 = dma.done.wait [#allocation4], 128  }
 0x28d   :  { %562 = vsyncadd [#allocation4], 4294967168 }
 0x28e   :  { %328 = vsyncpa [#allocation3], 1 }
 0x28f   :  { %329 = vsyncpa [#allocation6], 1 }
 0x290   :  { %330 = vsyncpa [#allocation4], 1 }

</bundles_post_ra>
